<compile_context>
chip_gen: v6e
topology: v6e:2x2x1
jax: 0.10.0
libtpu: 0.0.40
codegen_flags: <defaults>
</compile_context>

<pallas_src>
import math
import functools

import jax
import jax.numpy as jnp
from jax import lax
from jax.experimental import pallas as pl
from jax.experimental.pallas import tpu as pltpu


def _attention_block_kernel(x_ref, wqkv_ref, bqkv_ref, wo_ref, bo_ref,
                            gamma_ref, beta_ref, o_ref, attn_scratch,
                            *, n_heads, eps):
    x = x_ref[0]                                           # (L, D), native dtype
    L, D = x.shape
    H = n_heads
    E = D // H

    # Fused Q/K/V projection: one (L, D) x (D, 3D) matmul on the MXU.
    # The softmax scale is already folded into the Q columns of wqkv/bqkv.
    qkv = jnp.dot(x, wqkv_ref[...], preferred_element_type=jnp.float32)
    qkv = qkv + bqkv_ref[...]                              # (L, 3D), f32

    # Per-head full attention (H is small and static; loop is fully unrolled).
    # dot_general contracts the minor dim of both operands (A @ B^T), so no
    # explicit transpose of K is emitted.
    dn_qkT = (((1,), (1,)), ((), ()))
    for h in range(H):
        qh = qkv[:, h * E:(h + 1) * E]                     # (L, E), pre-scaled
        kh = qkv[:, D + h * E:D + (h + 1) * E]             # (L, E)
        vh = qkv[:, 2 * D + h * E:2 * D + (h + 1) * E]     # (L, E)

        s = lax.dot_general(qh, kh, dn_qkT,
                            preferred_element_type=jnp.float32)         # (L, L)
        s = s - jnp.max(s, axis=-1, keepdims=True)
        p = jnp.exp(s)
        denom = jnp.sum(p, axis=-1, keepdims=True)
        a = p * pl.reciprocal(denom, approx=True)          # EUP reciprocal
        # TODO(synk): attention dropout (p=0.1) treated as inference-mode identity.
        attn_scratch[:, h * E:(h + 1) * E] = jnp.dot(
            a, vh, preferred_element_type=jnp.float32)

    attn_out = attn_scratch[...]                           # (L, D), f32

    new_x = jnp.dot(attn_out, wo_ref[...],
                    preferred_element_type=jnp.float32) + bo_ref[...]

    # Residual (+ dropout treated as identity) followed by LayerNorm (norm2), in f32.
    xr = x.astype(jnp.float32) + new_x
    mean = jnp.mean(xr, axis=-1, keepdims=True)
    var = jnp.mean(jnp.square(xr - mean), axis=-1, keepdims=True)
    y = (xr - mean) * lax.rsqrt(var + eps)
    y = y * gamma_ref[...] + beta_ref[...]
    o_ref[0] = y.astype(o_ref.dtype)


def attention_block_forward(x, params, n_heads):
    B, L, D = x.shape
    wq, bq, wk, bk, wv, bv, wo, bo, gamma, beta = params
    E = D // n_heads
    scale = 1.0 / math.sqrt(E)

    # Fold the softmax scale into the Q projection and fuse the three
    # projection weights/biases once, outside the kernel.
    wqkv = jnp.concatenate([wq * scale, wk, wv], axis=1)   # (D, 3D)
    bqkv = jnp.concatenate([bq * scale, bk, bv], axis=1)   # (1, 3D)

    kernel = functools.partial(_attention_block_kernel, n_heads=n_heads, eps=1e-5)

    x_spec = pl.BlockSpec((1, L, D), lambda b: (b, 0, 0))
    wqkv_spec = pl.BlockSpec((D, 3 * D), lambda b: (0, 0))
    bqkv_spec = pl.BlockSpec((1, 3 * D), lambda b: (0, 0))
    wo_spec = pl.BlockSpec((D, D), lambda b: (0, 0))
    vec_spec = pl.BlockSpec((1, D), lambda b: (0, 0))      # bo / gamma / beta

    return pl.pallas_call(
        kernel,
        out_shape=jax.ShapeDtypeStruct((B, L, D), x.dtype),
        grid=(B,),
        in_specs=[x_spec, wqkv_spec, bqkv_spec, wo_spec, vec_spec, vec_spec, vec_spec],
        out_specs=pl.BlockSpec((1, L, D), lambda b: (b, 0, 0)),
        scratch_shapes=[pltpu.VMEM((L, D), jnp.float32)],
        compiler_params=pltpu.CompilerParams(dimension_semantics=("parallel",)),
    )(x, wqkv, bqkv, wo, bo, gamma, beta)


def init_params(key, d_model):
    """Deterministic init mimicking nn.Linear default (uniform +-1/sqrt(fan_in))."""
    keys = jax.random.split(key, 8)
    lim = 1.0 / math.sqrt(d_model)

    def linear(kw, kb, in_dim, out_dim):
        w = jax.random.uniform(kw, (out_dim, in_dim), jnp.float32, -lim, lim)
        b = jax.random.uniform(kb, (out_dim,), jnp.float32, -lim, lim)
        return w.T, b.reshape(1, out_dim)   # pre-transposed to (in, out)

    wq, bq = linear(keys[0], keys[1], d_model, d_model)
    wk, bk = linear(keys[2], keys[3], d_model, d_model)
    wv, bv = linear(keys[4], keys[5], d_model, d_model)
    wo, bo = linear(keys[6], keys[7], d_model, d_model)
    gamma = jnp.ones((1, d_model), jnp.float32)            # LayerNorm default init
    beta = jnp.zeros((1, d_model), jnp.float32)
    return wq, bq, wk, bk, wv, bv, wo, bo, gamma, beta


def reference_forward(x, params, n_heads):
    """Pure-JAX reference mirroring the torch forward (eval mode)."""
    wq, bq, wk, bk, wv, bv, wo, bo, gamma, beta = params
    B, L, D = x.shape
    E = D // n_heads
    q = (x @ wq + bq).reshape(B, L, n_heads, E)
    k = (x @ wk + bk).reshape(B, L, n_heads, E)
    v = (x @ wv + bv).reshape(B, L, n_heads, E)
    scores = jnp.einsum('blhe,bshe->bhls', q, k)
    a = jax.nn.softmax(scores / math.sqrt(E), axis=-1)
    o = jnp.einsum('bhls,bshd->blhd', a, v).reshape(B, L, D)
    o = o @ wo + bo
    xr = x + o
    mean = xr.mean(-1, keepdims=True)
    var = ((xr - mean) ** 2).mean(-1, keepdims=True)
    return (xr - mean) / jnp.sqrt(var + 1e-5) * gamma + beta


if __name__ == "__main__":
    B, L, d_model, n_heads = 2, 8, 32, 8
    key = jax.random.PRNGKey(0)
    kx, kp = jax.random.split(key)

    x = jax.random.normal(kx, (B, L, d_model), jnp.float32)
    params = init_params(kp, d_model)

    out = attention_block_forward(x, params, n_heads)
    out = jax.block_until_ready(out)

    ref = reference_forward(x, params, n_heads)
    # Tolerance loosened slightly vs exact softmax because the kernel uses the
    # approximate EUP reciprocal for the softmax denominator.
    if not jnp.allclose(out, ref, atol=2e-3, rtol=2e-3):
        raise AssertionError("Pallas kernel output mismatch vs JAX reference")

    print("KERNEL_OK")
</pallas_src>

<mosaic_0001>
module attributes {stable_mosaic.version = 11 : i64} {
  func.func @_attention_block_kernel(%arg0: i32, %arg1: memref<1x8x32xf32, #tpu.memory_space<vmem>>, %arg2: memref<32x96xf32, #tpu.memory_space<vmem>>, %arg3: memref<1x96xf32, #tpu.memory_space<vmem>>, %arg4: memref<32x32xf32, #tpu.memory_space<vmem>>, %arg5: memref<1x32xf32, #tpu.memory_space<vmem>>, %arg6: memref<1x32xf32, #tpu.memory_space<vmem>>, %arg7: memref<1x32xf32, #tpu.memory_space<vmem>>, %arg8: memref<1x8x32xf32, #tpu.memory_space<vmem>>, %arg9: memref<8x32xf32, #tpu.memory_space<vmem>>) attributes {dimension_semantics = [#tpu.dimension_semantics<parallel>], iteration_bounds = array<i64: 2>, scalar_prefetch = 0 : i64, scratch_operands = 1 : i64, tpu.core_type = #tpu.core_type<tc>, window_params = [{transform_indices = @transform_0, window_bounds = array<i64: 1, 8, 32>}, {pipeline_mode = #tpu.pipeline_mode<synchronous>, transform_indices = @transform_1, window_bounds = array<i64: 32, 96>}, {pipeline_mode = #tpu.pipeline_mode<synchronous>, transform_indices = @transform_2, window_bounds = array<i64: 1, 96>}, {pipeline_mode = #tpu.pipeline_mode<synchronous>, transform_indices = @transform_3, window_bounds = array<i64: 32, 32>}, {pipeline_mode = #tpu.pipeline_mode<synchronous>, transform_indices = @transform_4, window_bounds = array<i64: 1, 32>}, {pipeline_mode = #tpu.pipeline_mode<synchronous>, transform_indices = @transform_5, window_bounds = array<i64: 1, 32>}, {pipeline_mode = #tpu.pipeline_mode<synchronous>, transform_indices = @transform_6, window_bounds = array<i64: 1, 32>}, {transform_indices = @transform_7, window_bounds = array<i64: 1, 8, 32>}]} {
    %c0 = arith.constant 0 : index
    %c0_0 = arith.constant 0 : index
    %c0_1 = arith.constant 0 : index
    %0 = vector.load %arg1[%c0, %c0_0, %c0_1] : memref<1x8x32xf32, #tpu.memory_space<vmem>>, vector<1x8x32xf32>
    %1 = vector.shape_cast %0 : vector<1x8x32xf32> to vector<8x32xf32>
    %c0_2 = arith.constant 0 : index
    %c0_3 = arith.constant 0 : index
    %2 = vector.load %arg2[%c0_2, %c0_3] : memref<32x96xf32, #tpu.memory_space<vmem>>, vector<32x96xf32>
    %cst = arith.constant dense<0.000000e+00> : vector<8x96xf32>
    %3 = tpu.matmul %1, %2, %cst {dimension_numbers = #tpu.dot_dimension_numbers<[1], [0], [0], [1], [0, 0, 1, 1], [], []>} : vector<8x32xf32>, vector<32x96xf32>, vector<8x96xf32> -> vector<8x96xf32>
    %c0_4 = arith.constant 0 : index
    %c0_5 = arith.constant 0 : index
    %4 = vector.load %arg3[%c0_4, %c0_5] : memref<1x96xf32, #tpu.memory_space<vmem>>, vector<1x96xf32>
    %5 = vector.broadcast %4 : vector<1x96xf32> to vector<8x96xf32>
    %6 = arith.addf %3, %5 : vector<8x96xf32>
    %7 = vector.extract_strided_slice %6 {offsets = [0, 0], sizes = [8, 4], strides = [1, 1]} : vector<8x96xf32> to vector<8x4xf32>
    %8 = vector.extract_strided_slice %6 {offsets = [0, 32], sizes = [8, 4], strides = [1, 1]} : vector<8x96xf32> to vector<8x4xf32>
    %9 = vector.extract_strided_slice %6 {offsets = [0, 64], sizes = [8, 4], strides = [1, 1]} : vector<8x96xf32> to vector<8x4xf32>
    %cst_6 = arith.constant dense<0.000000e+00> : vector<8x8xf32>
    %10 = tpu.matmul %7, %8, %cst_6 {dimension_numbers = #tpu.dot_dimension_numbers<[1], [1], [0], [0], [0, 0, 1, 0], [], []>} : vector<8x4xf32>, vector<8x4xf32>, vector<8x8xf32> -> vector<8x8xf32>
    %cst_7 = arith.constant dense<0xFF800000> : vector<8xf32>
    %11 = vector.multi_reduction <maximumf>, %10, %cst_7 [1] : vector<8x8xf32> to vector<8xf32>
    %12 = vector.shape_cast %11 : vector<8xf32> to vector<8x1xf32>
    %13 = vector.broadcast %12 : vector<8x1xf32> to vector<8x8xf32>
    %14 = arith.subf %10, %13 : vector<8x8xf32>
    %15 = math.exp %14 : vector<8x8xf32>
    %cst_8 = arith.constant dense<0.000000e+00> : vector<8xf32>
    %16 = vector.multi_reduction <add>, %15, %cst_8 [1] : vector<8x8xf32> to vector<8xf32>
    %17 = vector.shape_cast %16 : vector<8xf32> to vector<8x1xf32>
    %18 = tpu.reciprocal %17 {approx = true} : vector<8x1xf32> -> vector<8x1xf32>
    %19 = vector.broadcast %18 : vector<8x1xf32> to vector<8x8xf32>
    %20 = arith.mulf %15, %19 : vector<8x8xf32>
    %cst_9 = arith.constant dense<0.000000e+00> : vector<8x4xf32>
    %21 = tpu.matmul %20, %9, %cst_9 {dimension_numbers = #tpu.dot_dimension_numbers<[1], [0], [0], [1], [0, 0, 1, 1], [], []>} : vector<8x8xf32>, vector<8x4xf32>, vector<8x4xf32> -> vector<8x4xf32>
    %c0_10 = arith.constant 0 : index
    %c0_11 = arith.constant 0 : index
    %22 = vector.load %arg9[%c0_10, %c0_11] : memref<8x32xf32, #tpu.memory_space<vmem>>, vector<8x4xf32>
    tpu.vector_store %arg9[%c0_10, %c0_11], %21 {strides = array<i32>} : memref<8x32xf32, #tpu.memory_space<vmem>>, vector<8x4xf32>,
    %23 = vector.extract_strided_slice %6 {offsets = [0, 4], sizes = [8, 4], strides = [1, 1]} : vector<8x96xf32> to vector<8x4xf32>
    %24 = vector.extract_strided_slice %6 {offsets = [0, 36], sizes = [8, 4], strides = [1, 1]} : vector<8x96xf32> to vector<8x4xf32>
    %25 = vector.extract_strided_slice %6 {offsets = [0, 68], sizes = [8, 4], strides = [1, 1]} : vector<8x96xf32> to vector<8x4xf32>
    %cst_12 = arith.constant dense<0.000000e+00> : vector<8x8xf32>
    %26 = tpu.matmul %23, %24, %cst_12 {dimension_numbers = #tpu.dot_dimension_numbers<[1], [1], [0], [0], [0, 0, 1, 0], [], []>} : vector<8x4xf32>, vector<8x4xf32>, vector<8x8xf32> -> vector<8x8xf32>
    %cst_13 = arith.constant dense<0xFF800000> : vector<8xf32>
    %27 = vector.multi_reduction <maximumf>, %26, %cst_13 [1] : vector<8x8xf32> to vector<8xf32>
    %28 = vector.shape_cast %27 : vector<8xf32> to vector<8x1xf32>
    %29 = vector.broadcast %28 : vector<8x1xf32> to vector<8x8xf32>
    %30 = arith.subf %26, %29 : vector<8x8xf32>
    %31 = math.exp %30 : vector<8x8xf32>
    %cst_14 = arith.constant dense<0.000000e+00> : vector<8xf32>
    %32 = vector.multi_reduction <add>, %31, %cst_14 [1] : vector<8x8xf32> to vector<8xf32>
    %33 = vector.shape_cast %32 : vector<8xf32> to vector<8x1xf32>
    %34 = tpu.reciprocal %33 {approx = true} : vector<8x1xf32> -> vector<8x1xf32>
    %35 = vector.broadcast %34 : vector<8x1xf32> to vector<8x8xf32>
    %36 = arith.mulf %31, %35 : vector<8x8xf32>
    %cst_15 = arith.constant dense<0.000000e+00> : vector<8x4xf32>
    %37 = tpu.matmul %36, %25, %cst_15 {dimension_numbers = #tpu.dot_dimension_numbers<[1], [0], [0], [1], [0, 0, 1, 1], [], []>} : vector<8x8xf32>, vector<8x4xf32>, vector<8x4xf32> -> vector<8x4xf32>
    %c0_16 = arith.constant 0 : index
    %c4 = arith.constant 4 : index
    %38 = vector.load %arg9[%c0_16, %c4] : memref<8x32xf32, #tpu.memory_space<vmem>>, vector<8x4xf32>
    tpu.vector_store %arg9[%c0_16, %c4], %37 {strides = array<i32>} : memref<8x32xf32, #tpu.memory_space<vmem>>, vector<8x4xf32>,
    %39 = vector.extract_strided_slice %6 {offsets = [0, 8], sizes = [8, 4], strides = [1, 1]} : vector<8x96xf32> to vector<8x4xf32>
    %40 = vector.extract_strided_slice %6 {offsets = [0, 40], sizes = [8, 4], strides = [1, 1]} : vector<8x96xf32> to vector<8x4xf32>
    %41 = vector.extract_strided_slice %6 {offsets = [0, 72], sizes = [8, 4], strides = [1, 1]} : vector<8x96xf32> to vector<8x4xf32>
    %cst_17 = arith.constant dense<0.000000e+00> : vector<8x8xf32>
    %42 = tpu.matmul %39, %40, %cst_17 {dimension_numbers = #tpu.dot_dimension_numbers<[1], [1], [0], [0], [0, 0, 1, 0], [], []>} : vector<8x4xf32>, vector<8x4xf32>, vector<8x8xf32> -> vector<8x8xf32>
    %cst_18 = arith.constant dense<0xFF800000> : vector<8xf32>
    %43 = vector.multi_reduction <maximumf>, %42, %cst_18 [1] : vector<8x8xf32> to vector<8xf32>
    %44 = vector.shape_cast %43 : vector<8xf32> to vector<8x1xf32>
    %45 = vector.broadcast %44 : vector<8x1xf32> to vector<8x8xf32>
    %46 = arith.subf %42, %45 : vector<8x8xf32>
    %47 = math.exp %46 : vector<8x8xf32>
    %cst_19 = arith.constant dense<0.000000e+00> : vector<8xf32>
    %48 = vector.multi_reduction <add>, %47, %cst_19 [1] : vector<8x8xf32> to vector<8xf32>
    %49 = vector.shape_cast %48 : vector<8xf32> to vector<8x1xf32>
    %50 = tpu.reciprocal %49 {approx = true} : vector<8x1xf32> -> vector<8x1xf32>
    %51 = vector.broadcast %50 : vector<8x1xf32> to vector<8x8xf32>
    %52 = arith.mulf %47, %51 : vector<8x8xf32>
    %cst_20 = arith.constant dense<0.000000e+00> : vector<8x4xf32>
    %53 = tpu.matmul %52, %41, %cst_20 {dimension_numbers = #tpu.dot_dimension_numbers<[1], [0], [0], [1], [0, 0, 1, 1], [], []>} : vector<8x8xf32>, vector<8x4xf32>, vector<8x4xf32> -> vector<8x4xf32>
    %c0_21 = arith.constant 0 : index
    %c8 = arith.constant 8 : index
    %54 = vector.load %arg9[%c0_21, %c8] : memref<8x32xf32, #tpu.memory_space<vmem>>, vector<8x4xf32>
    tpu.vector_store %arg9[%c0_21, %c8], %53 {strides = array<i32>} : memref<8x32xf32, #tpu.memory_space<vmem>>, vector<8x4xf32>,
    %55 = vector.extract_strided_slice %6 {offsets = [0, 12], sizes = [8, 4], strides = [1, 1]} : vector<8x96xf32> to vector<8x4xf32>
    %56 = vector.extract_strided_slice %6 {offsets = [0, 44], sizes = [8, 4], strides = [1, 1]} : vector<8x96xf32> to vector<8x4xf32>
    %57 = vector.extract_strided_slice %6 {offsets = [0, 76], sizes = [8, 4], strides = [1, 1]} : vector<8x96xf32> to vector<8x4xf32>
    %cst_22 = arith.constant dense<0.000000e+00> : vector<8x8xf32>
    %58 = tpu.matmul %55, %56, %cst_22 {dimension_numbers = #tpu.dot_dimension_numbers<[1], [1], [0], [0], [0, 0, 1, 0], [], []>} : vector<8x4xf32>, vector<8x4xf32>, vector<8x8xf32> -> vector<8x8xf32>
    %cst_23 = arith.constant dense<0xFF800000> : vector<8xf32>
    %59 = vector.multi_reduction <maximumf>, %58, %cst_23 [1] : vector<8x8xf32> to vector<8xf32>
    %60 = vector.shape_cast %59 : vector<8xf32> to vector<8x1xf32>
    %61 = vector.broadcast %60 : vector<8x1xf32> to vector<8x8xf32>
    %62 = arith.subf %58, %61 : vector<8x8xf32>
    %63 = math.exp %62 : vector<8x8xf32>
    %cst_24 = arith.constant dense<0.000000e+00> : vector<8xf32>
    %64 = vector.multi_reduction <add>, %63, %cst_24 [1] : vector<8x8xf32> to vector<8xf32>
    %65 = vector.shape_cast %64 : vector<8xf32> to vector<8x1xf32>
    %66 = tpu.reciprocal %65 {approx = true} : vector<8x1xf32> -> vector<8x1xf32>
    %67 = vector.broadcast %66 : vector<8x1xf32> to vector<8x8xf32>
    %68 = arith.mulf %63, %67 : vector<8x8xf32>
    %cst_25 = arith.constant dense<0.000000e+00> : vector<8x4xf32>
    %69 = tpu.matmul %68, %57, %cst_25 {dimension_numbers = #tpu.dot_dimension_numbers<[1], [0], [0], [1], [0, 0, 1, 1], [], []>} : vector<8x8xf32>, vector<8x4xf32>, vector<8x4xf32> -> vector<8x4xf32>
    %c0_26 = arith.constant 0 : index
    %c12 = arith.constant 12 : index
    %70 = vector.load %arg9[%c0_26, %c12] : memref<8x32xf32, #tpu.memory_space<vmem>>, vector<8x4xf32>
    tpu.vector_store %arg9[%c0_26, %c12], %69 {strides = array<i32>} : memref<8x32xf32, #tpu.memory_space<vmem>>, vector<8x4xf32>,
    %71 = vector.extract_strided_slice %6 {offsets = [0, 16], sizes = [8, 4], strides = [1, 1]} : vector<8x96xf32> to vector<8x4xf32>
    %72 = vector.extract_strided_slice %6 {offsets = [0, 48], sizes = [8, 4], strides = [1, 1]} : vector<8x96xf32> to vector<8x4xf32>
    %73 = vector.extract_strided_slice %6 {offsets = [0, 80], sizes = [8, 4], strides = [1, 1]} : vector<8x96xf32> to vector<8x4xf32>
    %cst_27 = arith.constant dense<0.000000e+00> : vector<8x8xf32>
    %74 = tpu.matmul %71, %72, %cst_27 {dimension_numbers = #tpu.dot_dimension_numbers<[1], [1], [0], [0], [0, 0, 1, 0], [], []>} : vector<8x4xf32>, vector<8x4xf32>, vector<8x8xf32> -> vector<8x8xf32>
    %cst_28 = arith.constant dense<0xFF800000> : vector<8xf32>
    %75 = vector.multi_reduction <maximumf>, %74, %cst_28 [1] : vector<8x8xf32> to vector<8xf32>
    %76 = vector.shape_cast %75 : vector<8xf32> to vector<8x1xf32>
    %77 = vector.broadcast %76 : vector<8x1xf32> to vector<8x8xf32>
    %78 = arith.subf %74, %77 : vector<8x8xf32>
    %79 = math.exp %78 : vector<8x8xf32>
    %cst_29 = arith.constant dense<0.000000e+00> : vector<8xf32>
    %80 = vector.multi_reduction <add>, %79, %cst_29 [1] : vector<8x8xf32> to vector<8xf32>
    %81 = vector.shape_cast %80 : vector<8xf32> to vector<8x1xf32>
    %82 = tpu.reciprocal %81 {approx = true} : vector<8x1xf32> -> vector<8x1xf32>
    %83 = vector.broadcast %82 : vector<8x1xf32> to vector<8x8xf32>
    %84 = arith.mulf %79, %83 : vector<8x8xf32>
    %cst_30 = arith.constant dense<0.000000e+00> : vector<8x4xf32>
    %85 = tpu.matmul %84, %73, %cst_30 {dimension_numbers = #tpu.dot_dimension_numbers<[1], [0], [0], [1], [0, 0, 1, 1], [], []>} : vector<8x8xf32>, vector<8x4xf32>, vector<8x4xf32> -> vector<8x4xf32>
    %c0_31 = arith.constant 0 : index
    %c16 = arith.constant 16 : index
    %86 = vector.load %arg9[%c0_31, %c16] : memref<8x32xf32, #tpu.memory_space<vmem>>, vector<8x4xf32>
    tpu.vector_store %arg9[%c0_31, %c16], %85 {strides = array<i32>} : memref<8x32xf32, #tpu.memory_space<vmem>>, vector<8x4xf32>,
    %87 = vector.extract_strided_slice %6 {offsets = [0, 20], sizes = [8, 4], strides = [1, 1]} : vector<8x96xf32> to vector<8x4xf32>
    %88 = vector.extract_strided_slice %6 {offsets = [0, 52], sizes = [8, 4], strides = [1, 1]} : vector<8x96xf32> to vector<8x4xf32>
    %89 = vector.extract_strided_slice %6 {offsets = [0, 84], sizes = [8, 4], strides = [1, 1]} : vector<8x96xf32> to vector<8x4xf32>
    %cst_32 = arith.constant dense<0.000000e+00> : vector<8x8xf32>
    %90 = tpu.matmul %87, %88, %cst_32 {dimension_numbers = #tpu.dot_dimension_numbers<[1], [1], [0], [0], [0, 0, 1, 0], [], []>} : vector<8x4xf32>, vector<8x4xf32>, vector<8x8xf32> -> vector<8x8xf32>
    %cst_33 = arith.constant dense<0xFF800000> : vector<8xf32>
    %91 = vector.multi_reduction <maximumf>, %90, %cst_33 [1] : vector<8x8xf32> to vector<8xf32>
    %92 = vector.shape_cast %91 : vector<8xf32> to vector<8x1xf32>
    %93 = vector.broadcast %92 : vector<8x1xf32> to vector<8x8xf32>
    %94 = arith.subf %90, %93 : vector<8x8xf32>
    %95 = math.exp %94 : vector<8x8xf32>
    %cst_34 = arith.constant dense<0.000000e+00> : vector<8xf32>
    %96 = vector.multi_reduction <add>, %95, %cst_34 [1] : vector<8x8xf32> to vector<8xf32>
    %97 = vector.shape_cast %96 : vector<8xf32> to vector<8x1xf32>
    %98 = tpu.reciprocal %97 {approx = true} : vector<8x1xf32> -> vector<8x1xf32>
    %99 = vector.broadcast %98 : vector<8x1xf32> to vector<8x8xf32>
    %100 = arith.mulf %95, %99 : vector<8x8xf32>
    %cst_35 = arith.constant dense<0.000000e+00> : vector<8x4xf32>
    %101 = tpu.matmul %100, %89, %cst_35 {dimension_numbers = #tpu.dot_dimension_numbers<[1], [0], [0], [1], [0, 0, 1, 1], [], []>} : vector<8x8xf32>, vector<8x4xf32>, vector<8x4xf32> -> vector<8x4xf32>
    %c0_36 = arith.constant 0 : index
    %c20 = arith.constant 20 : index
    %102 = vector.load %arg9[%c0_36, %c20] : memref<8x32xf32, #tpu.memory_space<vmem>>, vector<8x4xf32>
    tpu.vector_store %arg9[%c0_36, %c20], %101 {strides = array<i32>} : memref<8x32xf32, #tpu.memory_space<vmem>>, vector<8x4xf32>,
    %103 = vector.extract_strided_slice %6 {offsets = [0, 24], sizes = [8, 4], strides = [1, 1]} : vector<8x96xf32> to vector<8x4xf32>
    %104 = vector.extract_strided_slice %6 {offsets = [0, 56], sizes = [8, 4], strides = [1, 1]} : vector<8x96xf32> to vector<8x4xf32>
    %105 = vector.extract_strided_slice %6 {offsets = [0, 88], sizes = [8, 4], strides = [1, 1]} : vector<8x96xf32> to vector<8x4xf32>
    %cst_37 = arith.constant dense<0.000000e+00> : vector<8x8xf32>
    %106 = tpu.matmul %103, %104, %cst_37 {dimension_numbers = #tpu.dot_dimension_numbers<[1], [1], [0], [0], [0, 0, 1, 0], [], []>} : vector<8x4xf32>, vector<8x4xf32>, vector<8x8xf32> -> vector<8x8xf32>
    %cst_38 = arith.constant dense<0xFF800000> : vector<8xf32>
    %107 = vector.multi_reduction <maximumf>, %106, %cst_38 [1] : vector<8x8xf32> to vector<8xf32>
    %108 = vector.shape_cast %107 : vector<8xf32> to vector<8x1xf32>
    %109 = vector.broadcast %108 : vector<8x1xf32> to vector<8x8xf32>
    %110 = arith.subf %106, %109 : vector<8x8xf32>
    %111 = math.exp %110 : vector<8x8xf32>
    %cst_39 = arith.constant dense<0.000000e+00> : vector<8xf32>
    %112 = vector.multi_reduction <add>, %111, %cst_39 [1] : vector<8x8xf32> to vector<8xf32>
    %113 = vector.shape_cast %112 : vector<8xf32> to vector<8x1xf32>
    %114 = tpu.reciprocal %113 {approx = true} : vector<8x1xf32> -> vector<8x1xf32>
    %115 = vector.broadcast %114 : vector<8x1xf32> to vector<8x8xf32>
    %116 = arith.mulf %111, %115 : vector<8x8xf32>
    %cst_40 = arith.constant dense<0.000000e+00> : vector<8x4xf32>
    %117 = tpu.matmul %116, %105, %cst_40 {dimension_numbers = #tpu.dot_dimension_numbers<[1], [0], [0], [1], [0, 0, 1, 1], [], []>} : vector<8x8xf32>, vector<8x4xf32>, vector<8x4xf32> -> vector<8x4xf32>
    %c0_41 = arith.constant 0 : index
    %c24 = arith.constant 24 : index
    %118 = vector.load %arg9[%c0_41, %c24] : memref<8x32xf32, #tpu.memory_space<vmem>>, vector<8x4xf32>
    tpu.vector_store %arg9[%c0_41, %c24], %117 {strides = array<i32>} : memref<8x32xf32, #tpu.memory_space<vmem>>, vector<8x4xf32>,
    %119 = vector.extract_strided_slice %6 {offsets = [0, 28], sizes = [8, 4], strides = [1, 1]} : vector<8x96xf32> to vector<8x4xf32>
    %120 = vector.extract_strided_slice %6 {offsets = [0, 60], sizes = [8, 4], strides = [1, 1]} : vector<8x96xf32> to vector<8x4xf32>
    %121 = vector.extract_strided_slice %6 {offsets = [0, 92], sizes = [8, 4], strides = [1, 1]} : vector<8x96xf32> to vector<8x4xf32>
    %cst_42 = arith.constant dense<0.000000e+00> : vector<8x8xf32>
    %122 = tpu.matmul %119, %120, %cst_42 {dimension_numbers = #tpu.dot_dimension_numbers<[1], [1], [0], [0], [0, 0, 1, 0], [], []>} : vector<8x4xf32>, vector<8x4xf32>, vector<8x8xf32> -> vector<8x8xf32>
    %cst_43 = arith.constant dense<0xFF800000> : vector<8xf32>
    %123 = vector.multi_reduction <maximumf>, %122, %cst_43 [1] : vector<8x8xf32> to vector<8xf32>
    %124 = vector.shape_cast %123 : vector<8xf32> to vector<8x1xf32>
    %125 = vector.broadcast %124 : vector<8x1xf32> to vector<8x8xf32>
    %126 = arith.subf %122, %125 : vector<8x8xf32>
    %127 = math.exp %126 : vector<8x8xf32>
    %cst_44 = arith.constant dense<0.000000e+00> : vector<8xf32>
    %128 = vector.multi_reduction <add>, %127, %cst_44 [1] : vector<8x8xf32> to vector<8xf32>
    %129 = vector.shape_cast %128 : vector<8xf32> to vector<8x1xf32>
    %130 = tpu.reciprocal %129 {approx = true} : vector<8x1xf32> -> vector<8x1xf32>
    %131 = vector.broadcast %130 : vector<8x1xf32> to vector<8x8xf32>
    %132 = arith.mulf %127, %131 : vector<8x8xf32>
    %cst_45 = arith.constant dense<0.000000e+00> : vector<8x4xf32>
    %133 = tpu.matmul %132, %121, %cst_45 {dimension_numbers = #tpu.dot_dimension_numbers<[1], [0], [0], [1], [0, 0, 1, 1], [], []>} : vector<8x8xf32>, vector<8x4xf32>, vector<8x4xf32> -> vector<8x4xf32>
    %c0_46 = arith.constant 0 : index
    %c28 = arith.constant 28 : index
    %134 = vector.load %arg9[%c0_46, %c28] : memref<8x32xf32, #tpu.memory_space<vmem>>, vector<8x4xf32>
    tpu.vector_store %arg9[%c0_46, %c28], %133 {strides = array<i32>} : memref<8x32xf32, #tpu.memory_space<vmem>>, vector<8x4xf32>,
    %c0_47 = arith.constant 0 : index
    %c0_48 = arith.constant 0 : index
    %135 = vector.load %arg9[%c0_47, %c0_48] : memref<8x32xf32, #tpu.memory_space<vmem>>, vector<8x32xf32>
    %c0_49 = arith.constant 0 : index
    %c0_50 = arith.constant 0 : index
    %136 = vector.load %arg4[%c0_49, %c0_50] : memref<32x32xf32, #tpu.memory_space<vmem>>, vector<32x32xf32>
    %cst_51 = arith.constant dense<0.000000e+00> : vector<8x32xf32>
    %137 = tpu.matmul %135, %136, %cst_51 {dimension_numbers = #tpu.dot_dimension_numbers<[1], [0], [0], [1], [0, 0, 1, 1], [], []>} : vector<8x32xf32>, vector<32x32xf32>, vector<8x32xf32> -> vector<8x32xf32>
    %c0_52 = arith.constant 0 : index
    %c0_53 = arith.constant 0 : index
    %138 = vector.load %arg5[%c0_52, %c0_53] : memref<1x32xf32, #tpu.memory_space<vmem>>, vector<1x32xf32>
    %139 = vector.broadcast %138 : vector<1x32xf32> to vector<8x32xf32>
    %140 = arith.addf %137, %139 : vector<8x32xf32>
    %141 = arith.addf %1, %140 : vector<8x32xf32>
    %cst_54 = arith.constant dense<0.000000e+00> : vector<8xf32>
    %142 = vector.multi_reduction <add>, %141, %cst_54 [1] : vector<8x32xf32> to vector<8xf32>
    %143 = vector.shape_cast %142 : vector<8xf32> to vector<8x1xf32>
    %cst_55 = arith.constant 3.200000e+01 : f32
    %144 = vector.broadcast %cst_55 : f32 to vector<8x1xf32>
    %145 = arith.divf %143, %144 : vector<8x1xf32>
    %146 = vector.broadcast %145 : vector<8x1xf32> to vector<8x32xf32>
    %147 = arith.subf %141, %146 : vector<8x32xf32>
    %148 = arith.mulf %147, %147 : vector<8x32xf32>
    %cst_56 = arith.constant dense<0.000000e+00> : vector<8xf32>
    %149 = vector.multi_reduction <add>, %148, %cst_56 [1] : vector<8x32xf32> to vector<8xf32>
    %150 = vector.shape_cast %149 : vector<8xf32> to vector<8x1xf32>
    %cst_57 = arith.constant 3.200000e+01 : f32
    %151 = vector.broadcast %cst_57 : f32 to vector<8x1xf32>
    %152 = arith.divf %150, %151 : vector<8x1xf32>
    %153 = vector.broadcast %145 : vector<8x1xf32> to vector<8x32xf32>
    %154 = arith.subf %141, %153 : vector<8x32xf32>
    %cst_58 = arith.constant 9.99999974E-6 : f32
    %155 = vector.broadcast %cst_58 : f32 to vector<8x1xf32>
    %156 = arith.addf %152, %155 : vector<8x1xf32>
    %157 = math.rsqrt %156 : vector<8x1xf32>
    %158 = vector.broadcast %157 : vector<8x1xf32> to vector<8x32xf32>
    %159 = arith.mulf %154, %158 : vector<8x32xf32>
    %c0_59 = arith.constant 0 : index
    %c0_60 = arith.constant 0 : index
    %160 = vector.load %arg6[%c0_59, %c0_60] : memref<1x32xf32, #tpu.memory_space<vmem>>, vector<1x32xf32>
    %161 = vector.broadcast %160 : vector<1x32xf32> to vector<8x32xf32>
    %162 = arith.mulf %159, %161 : vector<8x32xf32>
    %c0_61 = arith.constant 0 : index
    %c0_62 = arith.constant 0 : index
    %163 = vector.load %arg7[%c0_61, %c0_62] : memref<1x32xf32, #tpu.memory_space<vmem>>, vector<1x32xf32>
    %164 = vector.broadcast %163 : vector<1x32xf32> to vector<8x32xf32>
    %165 = arith.addf %162, %164 : vector<8x32xf32>
    %c0_63 = arith.constant 0 : index
    %c0_64 = arith.constant 0 : index
    %c0_65 = arith.constant 0 : index
    %166 = vector.load %arg8[%c0_63, %c0_64, %c0_65] : memref<1x8x32xf32, #tpu.memory_space<vmem>>, vector<1x8x32xf32>
    %167 = vector.shape_cast %166 : vector<1x8x32xf32> to vector<8x32xf32>
    %168 = vector.shape_cast %165 : vector<8x32xf32> to vector<1x8x32xf32>
    tpu.vector_store %arg8[%c0_63, %c0_64, %c0_65], %168 {strides = array<i32>} : memref<1x8x32xf32, #tpu.memory_space<vmem>>, vector<1x8x32xf32>,
    return
  }
  func.func @transform_0(%arg0: i32) -> (i32, i32, i32) {
    %c0_i32 = arith.constant 0 : i32
    %c0_i32_0 = arith.constant 0 : i32
    %c0_i32_1 = arith.constant 0 : i32
    return %arg0, %c0_i32, %c0_i32_0 : i32, i32, i32
  }
  func.func @transform_1(%arg0: i32) -> (i32, i32) {
    %c0_i32 = arith.constant 0 : i32
    %c0_i32_0 = arith.constant 0 : i32
    %c0_i32_1 = arith.constant 0 : i32
    return %c0_i32, %c0_i32_0 : i32, i32
  }
  func.func @transform_2(%arg0: i32) -> (i32, i32) {
    %c0_i32 = arith.constant 0 : i32
    %c0_i32_0 = arith.constant 0 : i32
    %c0_i32_1 = arith.constant 0 : i32
    return %c0_i32, %c0_i32_0 : i32, i32
  }
  func.func @transform_3(%arg0: i32) -> (i32, i32) {
    %c0_i32 = arith.constant 0 : i32
    %c0_i32_0 = arith.constant 0 : i32
    %c0_i32_1 = arith.constant 0 : i32
    return %c0_i32, %c0_i32_0 : i32, i32
  }
  func.func @transform_4(%arg0: i32) -> (i32, i32) {
    %c0_i32 = arith.constant 0 : i32
    %c0_i32_0 = arith.constant 0 : i32
    %c0_i32_1 = arith.constant 0 : i32
    return %c0_i32, %c0_i32_0 : i32, i32
  }
  func.func @transform_5(%arg0: i32) -> (i32, i32) {
    %c0_i32 = arith.constant 0 : i32
    %c0_i32_0 = arith.constant 0 : i32
    %c0_i32_1 = arith.constant 0 : i32
    return %c0_i32, %c0_i32_0 : i32, i32
  }
  func.func @transform_6(%arg0: i32) -> (i32, i32) {
    %c0_i32 = arith.constant 0 : i32
    %c0_i32_0 = arith.constant 0 : i32
    %c0_i32_1 = arith.constant 0 : i32
    return %c0_i32, %c0_i32_0 : i32, i32
  }
  func.func @transform_7(%arg0: i32) -> (i32, i32, i32) {
    %c0_i32 = arith.constant 0 : i32
    %c0_i32_0 = arith.constant 0 : i32
    %c0_i32_1 = arith.constant 0 : i32
    return %arg0, %c0_i32, %c0_i32_0 : i32, i32, i32
  }
}

</mosaic_0001>

<bundles_post_ra>
// kernel: tpu_custom_call.1
= control target key start
LH: loop header
LB: loop body
LE: loop exit
PB: predicated region body
PF: predicated region fallthrough
CT: control target
= control target key end

     0   :  { %s2897_s0 = inlined_call_operand.hbm [shape: f32[2,8,32], index: 0, kind: input, shape index: {}]   ;;  %s2898_s1 = inlined_call_operand.hbm [shape: f32[32,96], index: 1, kind: input, shape index: {}]   ;;  %s2899_s2 = inlined_call_operand.vmem [shape: f32[1,96], index: 2, kind: input, shape index: {}]   ;;  %s2900_s3 = inlined_call_operand.hbm [shape: f32[32,32], index: 3, kind: input, shape index: {}]   ;;  %s2901_s4 = inlined_call_operand.vmem [shape: f32[1,32], index: 4, kind: input, shape index: {}]   ;;  %s2902_s5 = inlined_call_operand.vmem [shape: f32[1,32], index: 5, kind: input, shape index: {}]   ;;  %s2903_s6 = inlined_call_operand.vmem [shape: f32[1,32], index: 6, kind: input, shape index: {}]   ;;  %s2904_s7 = inlined_call_operand.hbm [shape: f32[2,8,32], index: 7, kind: output, shape index: {}]  }
   0x1   :  { %2909 = sst [smem:[#allocation13_spill]] %s2898_s1 }
   0x2   :  { %2910 = sst [smem:[#allocation14_spill]] %s2900_s3 }
   0x3   :  { %12 = vsyncpa [#allocation4], 0 }
   0x4   :  { %14 = vsyncpa [#allocation4 + $0x1], 0 }
   0x5   :  { %15 = vsyncpa [#allocation7], 0 }
   0x6   :  { %16 = vsyncpa [#allocation5], 0 }
   0x7   :  { %18 = vsyncpa [#allocation5 + $0x1], 0  ;;  %s2546_s24 = smov 0   ;;  %s2548_s25 = smov 0  }
   0x8   :  { %s2550_s26 = smov 0   ;;  %s2552_s27 = smov 0  }
   0x9 LB: > { %s2567_s28 = sadd.s32 4294967295, %s2466_s27   ;;  %s1993_s29 = sadd.s32 4294967294, %s2466_s27   ;;  %s2466_s27 = sphi %s2552_s27, %s2930_s27   ;;  %s2462_s26 = sphi %s2550_s26, %s2929_s26   ;;  %s2458_s25 = sphi %s2548_s25, %s2928_s25   ;;  %s2454_s24 = sphi %s2546_s24, %s2927_s24  }
   0xa   : > { %p44_p0 = scmp.ne.s32.totalorder %s2458_s25, %s2454_s24  ;;  %p2905_p1 = scmp.eq.s32.totalorder %s2567_s28, 0 }
   0xb   : > { %p200_p3 = scmp.eq.s32.totalorder %s1993_s29, 1  ;;  %p1994_p5 = scmp.ge.s32.totalorder %s2466_s27, 1 }
   0xc   : > { %p2576_p4 = por %p2905_p1, %p44_p0  ;;  %p207_p7 = scmp.lt.s32.totalorder %s2466_s27, 3 }
   0xd   : > { %p2581_p6 = por %p200_p3, %p44_p0  ;;  %s2468_s10 = smov [#allocation6]  }
   0xe   : > { %s2911_s30 = scalar_select %p2576_p4, 1, 0 }
   0xf   : > { %s2912_s8 = scalar_select %p2581_p6, 1, 0 }
  0x10   : > { %p2586_p8 = pnand %p1994_p5, %p207_p7  ;;  %s219_s11 = sshll.u32 %s2468_s10, 4  ;;  %s220_s11 = int_to_ptr.vmem [resolvable:$true] %s219_s11 }
  0x11   : > { %s2469_s13 = smov [#allocation8]   ;;  %s2329_s15 = scalar_lea.vmem %s220_s11, 512 }
  0x12   : > { %s2913_s9 = scalar_select %p2586_p8, 1, 0 }
  0x13   : > { %p2195_p9 = pneg %p2586_p8  ;;  %s235_s14 = sshll.u32 %s2469_s13, 4  ;;  %s236_s14 = int_to_ptr.vmem [resolvable:$true] %s235_s14 }
  0x14   : > { %p2330_p13 = scmp.ne.s32.totalorder %s220_s11, %s2329_s15  ;;  %p2337_p5 = scmp.lt.s32.totalorder %s220_s11, %s220_s11 }
  0x15   : > { %p2595_p11 = pnand %p2195_p9, %p2905_p1  ;;  %p2338_p7 = scmp.lt.s32.totalorder %s2329_s15, %s2329_s15 }
  0x17   : > { %p2320_p12 = pneg %p2595_p11  ;;  %p2339_p10 = por %p2338_p7, %p2337_p5 }
  0x19   : > { %p2332_p0 = pnand %p2330_p13, %p2320_p12 }
  0x1b   : > { %p2333_p3 = pneg %p2332_p0 }
  0x1d   : > { %p2340_p9 = pnand %p2339_p10, %p2333_p3 }
  0x1f   : > { %2343 = shalt.err (!%p2340_p9)
}
  0x20   : > { %s2470_s16 = smov 128   ;;  %s2471_s17 = smov 8  }
  0x21   : > { %s2915_s1 = sld [smem:[#allocation13_spill]]  ;;  %s2355_s20 = scalar_lea.vmem %s236_s14, 512 }
  0x22   : > { %p2356_p1 = scmp.ne.s32.totalorder %s236_s14, %s2355_s20  ;;  %p2363_p2 = scmp.lt.s32.totalorder %s236_s14, %s236_s14 }
  0x23   : > { %p2364_p6 = scmp.lt.s32.totalorder %s2355_s20, %s2355_s20 }
  0x24   : > { %p2358_p13 = pnand %p2356_p1, %p2320_p12 }
  0x25   : > { %p2365_p5 = por %p2364_p6, %p2363_p2 }
  0x26   : > { %p2359_p0 = pneg %p2358_p13 }
  0x27   : > { %2198 = dma.hbm_to_vmem [thread:$0]  (!%p2595_p11), %s2915_s1, 512, %s220_s11, [#allocation7], %s2470_s16, %s2470_s16, %s2471_s17  }
  0x28   : > { %p2366_p10 = pnand %p2365_p5, %p2359_p0 }
  0x2a   : > { %2369 = shalt.err (!%p2366_p10)
}
  0x2b   : > { %s2916_s3 = sld [smem:[#allocation14_spill]]  ;;  %s2618_s23 = sadd.s32 1, %s2466_s27  }
  0x2c   : > { %s31_s29 = sadd.s32 1, %s2462_s26  ;;  %s28_s10 = ssub.s32 %s2466_s27, %s2618_s23 }
  0x2d   : > { %p38_p1 = scmp.ne.s32.totalorder %s2462_s26, %s2458_s25  ;;  %p29_p2 = scmp.eq.s32.totalorder %s28_s10, 0 }
  0x2e   : > { %p39_p6 = scmp.eq.s32.totalorder %s2466_s27, 0  ;;  %p2917_p12 = scmp.eq.s32.totalorder %s2567_s28, 1 }
  0x2f   : > { %p2212_p7 = scmp.lt.s32.totalorder %s2466_s27, 2  ;;  %s258_s13 = sand.u32 1, %s2462_s26  }
  0x30   : > { %p2628_p3 = por %p2917_p12, %p38_p1  ;;  %p40_p9 = por %p39_p6, %p38_p1 }
  0x31   : > { %2201 = dma.hbm_to_vmem [thread:$0]  (!%p2595_p11), %s2916_s3, 512, %s236_s14, [#allocation7], %s2470_s16, %s2470_s16, %s2471_s17  }
  0x32   : > { %s2918_s11 = scalar_select %p2628_p3, 1, 0 }
  0x33   : > { %s2634_s12 = scalar_select %p29_p2, %s2462_s26, %s31_s29  }
  0x34   : > { %s1998_s15 = sshll.u32 %s258_s13, 3  ;;  %s1999_s14 = sshll.u32 %s2466_s27, 7 }
  0x35   : > { %s2641_s18 = scalar_lea.hbm %s2897_s0, %s1999_s14  ;;  %s262_s19 = scalar_lea.vmem [#allocation3], %s1998_s15 }
  0x36   : > { %s269_s20 = sshll.u32 %s262_s19, 4  ;;  %p2643_p11 = pnand %p2212_p7, %p40_p9  ;;  %s270_s20 = int_to_ptr.vmem [resolvable:$true] %s269_s20 }
  0x37   : > { %s259_s22 = scalar_lea.sflag [#allocation4], %s258_s13  ;;  %s2370_s29 = scalar_lea.hbm %s2641_s18, 128 }
  0x38   : > { %p2371_p13 = scmp.ne.s32.totalorder %s2641_s18, %s2370_s29  ;;  %p2372_p0 = pneg %p2643_p11 }
  0x39   : > { %s2375_s16 = scalar_lea.hbm %s2897_s0, 256  ;;  %p2376_p1 = scmp.lt.s32.totalorder %s2641_s18, %s2897_s0 }
  0x3a   : > { %p2373_p5 = pnand %p2372_p0, %p2371_p13  ;;  %p2377_p2 = scmp.lt.s32.totalorder %s2375_s16, %s2370_s29 }
  0x3c   : > { %p2374_p10 = pneg %p2373_p5  ;;  %p2378_p6 = por %p2377_p2, %p2376_p1 }
  0x3e   : > { %p2379_p12 = pnand %p2378_p6, %p2374_p10 }
  0x40   : > { %2382 = shalt.err (!%p2379_p12)
}
  0x41   : > { %s2383_s19 = scalar_lea.vmem %s270_s20, 128  ;;  %s2472_s13 = smov [#allocation3]  }
  0x42   : > { %p2384_p7 = scmp.ne.s32.totalorder %s270_s20, %s2383_s19  ;;  %s2388_s1 = sshll.u32 %s2472_s13, 4  ;;  %s2389_s1 = int_to_ptr.vmem [resolvable:$false] %s2388_s1 }
  0x43   : > { %s2390_s3 = scalar_lea.vmem %s2389_s1, 256  ;;  %p2391_p13 = scmp.lt.s32.totalorder %s270_s20, %s2389_s1 }
  0x44   : > { %p2386_p9 = pnand %p2384_p7, %p2372_p0  ;;  %p2392_p5 = scmp.lt.s32.totalorder %s2390_s3, %s2383_s19 }
  0x46   : > { %p2387_p3 = pneg %p2386_p9  ;;  %p2393_p4 = por %p2392_p5, %p2391_p13 }
  0x48   : > { %p2394_p8 = pnand %p2393_p4, %p2387_p3 }
  0x4a   : > { %2397 = shalt.err (!%p2394_p8)
}
  0x4b   : > { %2205 = dma.hbm_to_vmem [thread:$0]  (!%p2643_p11), %s2641_s18, 128, %s270_s20, %s259_s22  }
  0x4c   : > { %p2920_p10 = scmp.ne.s32.totalorder %s2913_s9, 0 }
  0x4d   : > { %s2664_s29 = sand.u32 (!%p2920_p10), 1, %s2458_s25   ;;  %p2921_p4 = scmp.ne.s32.totalorder (!%p2920_p10), %s2911_s30, 0 }
  0x4e   : > { %278 = sbr.rel (%p2920_p10) target bundleno = 2298 (0x8fa), region = 48  ;;  %s2001_s10 = sshll.u32 (!%p2920_p10), %s2664_s29, 3 }
  0x4f   : > { %s281_s1 = scalar_lea.sflag (!%p2920_p10), [#allocation4], %s2664_s29  ;;  %s284_s3 = scalar_lea.vmem (!%p2920_p10), [#allocation3], %s2001_s10 }
  0x53   : > { %2441 = dma.done.wait (%p2921_p4), %s281_s1, 128  }
  0x54   : > { %2443 = vsyncadd (%p2921_p4), %s281_s1, 4294967168  ;;  %p2922_p8 = scmp.eq.s32.totalorder %s2567_s28, 0 }
  0x56   : > { %2445 = dma.done.wait (%p2922_p8), [#allocation7], 1024   ;;  %p2923_p3 = pmov %p2922_p8 }
  0x57   : > { %v2473_v0 = vmov 0.0   ;;  %vm2474_vm0 = vmmov 0   ;;  %v327_v1 = vld [vmem:[#allocation6 + $0x18] sm:$0xff]  ;;  %v326_v2 = vld [vmem:[#allocation6 + $0x10] sm:$0xff]  ;;  %v325_v3 = vld [vmem:[#allocation6 + $0x8] sm:$0xff]  ;;  %vm335_vm1 = vcmask 261120  }
  0x58   : > { %2447 = vsyncadd (%p2923_p3), [#allocation7], 4294966272  ;;  %2081 = vmatprep.subr.mxu0 %v2473_v0  ;;  %2089 = vmatprep.mubr.msk.f32.mxu0 %vm2474_vm0, %v2473_v0  ;;  %v324_v4 = vld [vmem:[#allocation6] sm:$0xff]  ;;  %v2686_v5 = vld [vmem:[%s284_s3] sm:$0xff]  ;;  %s2475_s18 = smov 64   ;;  %s2476_s20 = smov 96  }
  0x59   : > { %2092 = vmatprep.subr.mxu1 %v2473_v0  ;;  %2094 = vmatprep.mubr.msk.f32.mxu1 %vm2474_vm0, %v2473_v0  ;;  %v2005_v6 = vld [vmem:[%s2899_s2] ss:$0 sm:$0xff]  ;;  %s2477_s21 = smov 92   ;;  %s2478_s22 = smov 124   ;;  %vm412_vm2 = vcmask 31744   ;;  %vm487_vm3 = vcmask 64512  }
  0x5a   : > { %2082 = vmatpush3.msra.mxu0 %v327_v1  ;;  %s2479_s14 = smov 88   ;;  %s2480_s16 = smov 120   ;;  %vm745_vm4 = vcmask 64544   ;;  %vm916_vm5 = vcmask 97344   ;;  %vm1087_vm6 = vcmask 130144   ;;  %vm1258_vm7 = vcmask 162944  }
  0x5b   : > { %2083 = vmatprep.subr.mxu0 %v2473_v0  ;;  %s2481_s17 = smov 116   ;;  %s2482_s15 = smov 84   ;;  %vm1429_vm8 = vcmask 195744   ;;  %vm1600_vm9 = vcmask 228544   ;;  %vm1771_vm10 = vcmask 261344  }
  0x5c   : > { %2084 = vmatpush3.msra.mxu0 %v326_v2  ;;  %s2483_s19 = smov 72   ;;  %s2484_s13 = smov 68  }
  0x5d   : > { %2085 = vmatprep.subr.mxu0 %v2473_v0  ;;  %s2485_s1 = smov 80   ;;  %s2486_s3 = smov 112  }
  0x5e   : > { %2086 = vmatpush3.msra.mxu0 %v325_v3  ;;  %s2487_s30 = smov 76   ;;  %s2488_s9 = smov 108  }
  0x5f   : > { %2087 = vmatprep.subr.mxu0 %v2473_v0  ;;  %p2924_p0 = scmp.ne.s32.totalorder %s2918_s11, 0 }
  0x60   : > { %2088 = vmatpush3.msra.mxu0 %v324_v4 }
  0x61   : > { %2090 = vmatmul.mubr.msk.f32.vlgmr.msra.gmra.mxu0 %vm335_vm1, %v2686_v5  ;;  %2112 = vmatprep.subr.mxu0 %v2473_v0 }
  0x62   : > { %2114 = vmatprep.mubr.msk.f32.mxu0 %vm2474_vm0, %v2473_v0 }
 0x121   : > { %v405_v7 = vpop.f32.mrf.mxu0 }
 0x122   : > { %v2697_v8 = vadd.f32 %v2005_v6, %v405_v7 }
 0x123   : > { %v2091_v9 = vpop.f32.mrf.mxu0 }
 0x124   : > { %499 = vrot.lane.b32.xlu1 %v2697_v8, %s2475_s18  ;;  %410 = vrot.lane.b32.xlu0 %v2697_v8, %s2476_s20  ;;  %s2489_s18 = smov 104   ;;  %s2490_s20 = smov 100  }
 0x128   : > { %578 = vrot.lane.b32.xlu1 %v2697_v8, %s2477_s21  ;;  %s2491_s21 = smov 60  }
 0x12c   : > { %576 = vrot.lane.b32.xlu1 %v2697_v8, %s2478_s22  ;;  %s2492_s22 = smov 52  }
 0x130   : > { %749 = vrot.lane.b32.xlu1 %v2697_v8, %s2479_s14  ;;  %s2493_s14 = smov 48  }
 0x134   : > { %747 = vrot.lane.b32.xlu1 %v2697_v8, %s2480_s16  ;;  %s2494_s16 = smov 56  }
 0x138   : > { %918 = vrot.lane.b32.xlu1 %v2697_v8, %s2481_s17  ;;  %s2495_s17 = smov 40  }
 0x196   : > { %v500_v10 = vpop.permute.xlu1 %499  ;;  %v411_v11 = vpop.permute.xlu0 %410 }
 0x197   : > { %2093 = vmatpush3.xpose.msk.msra.mxu1 %vm412_vm2, %v411_v11 }
 0x198   : > { %2097 = vmatprep.subr.mxu1 %v2473_v0 }
 0x19a   : > { %v2708_v12 = vpop.permute.xlu1 %578  ;;  %2095 = vmatmul.mubr.msk.f32.vlgmr.msra.gmra.mxu1 %vm412_vm2, %v2697_v8 }
 0x19b   : > { %2098 = vmatpush3.msra.mxu1 %v500_v10  ;;  %2099 = vmatprep.mubr.msk.f32.mxu1 %vm2474_vm0, %v2473_v0 }
 0x19c   : > { %2102 = vmatprep.subr.mxu1 %v2473_v0 }
 0x19e   : > { %v2715_v13 = vpop.permute.xlu1 %576 }
 0x1a2   : > { %v750_v14 = vpop.permute.xlu1 %749 }
 0x1a3   : > { %2113 = vmatpush3.xpose.msk.msra.mxu0 %vm412_vm2, %v750_v14 }
 0x1a4   : > { %2122 = vmatprep.subr.mxu0 %v2473_v0 }
 0x1a6   : > { %v748_v15 = vpop.permute.xlu1 %747 }
 0x1a7   : > { %2115 = vmatmul.mubr.msk.f32.vlgmr.msra.gmra.mxu0 %vm412_vm2, %v748_v15 }
 0x1a8   : > { %2124 = vmatprep.mubr.msk.f32.mxu0 %vm2474_vm0, %v2473_v0 }
 0x1aa   : > { %v919_v25 = vpop.permute.xlu1 %918 }
 0x25a   : > { %v483_v16 = vpop.f32.mrf.mxu1 }
 0x25b   : > { %v488_v17 = vsel %vm487_vm3, %v483_v16, -inf }
 0x25c   : > { %489 = vmax.xlane.f32.xlu0 %v488_v17  ;;  %v2096_v18 = vpop.f32.mrf.mxu1 }
 0x267   : > { %v2723_v19 = vpop.f32.mrf.mxu0 }
 0x268   : > { %v825_v28 = vsel %vm487_vm3, %v2723_v19, -inf }
 0x269   : > { %v2116_v20 = vpop.f32.mrf.mxu0 }
 0x272   : > { %920 = vrot.lane.b32.xlu0 %v2697_v8, %s2482_s15  ;;  %s2496_s15 = smov 44  }
 0x276   : > { %1433 = vrot.lane.b32.xlu0 %v2697_v8, %s2483_s19  ;;  %s2497_s19 = smov 36  }
 0x27a   : > { %1604 = vrot.lane.b32.xlu0 %v2697_v8, %s2484_s13  ;;  %s2498_s13 = smov 4  }
 0x2e5   : > { %v490_v21 = vpop.xlane.xlu0 %489 }
 0x2e6   : > { %v491_v22 = vsub.f32 %v483_v16, %v490_v21 }
 0x2e8   : > { %v492_v23 = vmul.f32 1.442695, %v491_v22 }
 0x2e9   : > { %v921_v24 = vpop.permute.xlu0 %920 }
 0x2ea   : > { %2284 = vpow2.f32 %v492_v23  ;;  %2123 = vmatpush3.xpose.msk.msra.mxu0 %vm412_vm2, %v921_v24 }
 0x2eb   : > { %2132 = vmatprep.subr.mxu0 %v2473_v0 }
 0x2ed   : > { %2125 = vmatmul.mubr.msk.f32.vlgmr.msra.gmra.mxu0 %vm412_vm2, %v919_v25  ;;  %v1434_v34 = vpop.permute.xlu0 %1433 }
 0x2ee   : > { %2134 = vmatprep.mubr.msk.f32.mxu0 %vm2474_vm0, %v2473_v0 }
 0x2f1   : > { %v1605_v38 = vpop.permute.xlu0 %1604 }
 0x2f7   : > { %v2285_v26 = vpop.eup %2284 }
 0x2f8   : > { %v494_v27 = vsel %vm487_vm3, %v2285_v26, 0.0 }
 0x2f9   : > { %495 = vadd.xlane.f32.xlu1 %v494_v27 }
 0x30a   : > { %1091 = vrot.lane.b32.xlu1 %v2697_v8, %s2485_s1  ;;  %s2499_s1 = smov 8  }
 0x30e   : > { %1089 = vrot.lane.b32.xlu1 %v2697_v8, %s2486_s3  ;;  %s2500_s3 = smov 12  }
 0x312   : > { %1262 = vrot.lane.b32.xlu1 %v2697_v8, %s2487_s30  ;;  %s2501_s30 = smov 16  }
 0x316   : > { %1260 = vrot.lane.b32.xlu1 %v2697_v8, %s2488_s9  ;;  %s2502_s9 = smov 20  }
 0x31a   : > { %1431 = vrot.lane.b32.xlu1 %v2697_v8, %s2489_s18  ;;  %s2503_s18 = smov 24  }
 0x31e   : > { %1602 = vrot.lane.b32.xlu1 %v2697_v8, %s2490_s20  ;;  %s2504_s20 = smov 28  }
 0x342   : > { %826 = vmax.xlane.f32.xlu1 %v825_v28 }
 0x382   : > { %v496_v29 = vpop.xlane.xlu1 %495 }
 0x383   : > { %2286 = vrcp.f32 %v496_v29 }
 0x386   : > { %v1092_v30 = vpop.permute.xlu1 %1091 }
 0x387   : > { %2133 = vmatpush3.xpose.msk.msra.mxu0 %vm412_vm2, %v1092_v30 }
 0x388   : > { %2142 = vmatprep.subr.mxu0 %v2473_v0 }
 0x38a   : > { %v1090_v31 = vpop.permute.xlu1 %1089 }
 0x38b   : > { %2135 = vmatmul.mubr.msk.f32.vlgmr.msra.gmra.mxu0 %vm412_vm2, %v1090_v31 }
 0x38c   : > { %2144 = vmatprep.mubr.msk.f32.mxu0 %vm2474_vm0, %v2473_v0 }
 0x38e   : > { %v1263_v32 = vpop.permute.xlu1 %1262 }
 0x38f   : > { %2143 = vmatpush3.xpose.msk.msra.mxu0 %vm412_vm2, %v1263_v32 }
 0x390   : > { %v2287_v33 = vpop.eup %2286  ;;  %2152 = vmatprep.subr.mxu0 %v2473_v0 }
 0x391   : > { %v498_v35 = vmul.f32 %v2287_v33, %v2285_v26 }
 0x392   : > { %v1261_v36 = vpop.permute.xlu1 %1260 }
 0x393   : > { %2100 = vmatmul.mubr.msk.f32.vlgmr.msra.gmra.mxu1 %vm487_vm3, %v498_v35  ;;  %2145 = vmatmul.mubr.msk.f32.vlgmr.msra.gmra.mxu0 %vm412_vm2, %v1261_v36 }
 0x394   : > { %2103 = vmatpush3.xpose.msk.msra.mxu1 %vm412_vm2, %v2708_v12  ;;  %2153 = vmatpush3.xpose.msk.msra.mxu0 %vm412_vm2, %v1434_v34 }
 0x395   : > { %2104 = vmatprep.mubr.msk.f32.mxu1 %vm2474_vm0, %v2473_v0  ;;  %2154 = vmatprep.mubr.msk.f32.mxu0 %vm2474_vm0, %v2473_v0 }
 0x396   : > { %v1432_v37 = vpop.permute.xlu1 %1431  ;;  %2162 = vmatprep.subr.mxu0 %v2473_v0  ;;  %2107 = vmatprep.subr.mxu1 %v2473_v0 }
 0x397   : > { %2105 = vmatmul.mubr.msk.f32.vlgmr.msra.gmra.mxu1 %vm412_vm2, %v2715_v13  ;;  %2155 = vmatmul.mubr.msk.f32.vlgmr.msra.gmra.mxu0 %vm412_vm2, %v1432_v37 }
 0x398   : > { %2163 = vmatpush3.xpose.msk.msra.mxu0 %vm412_vm2, %v1605_v38  ;;  %2164 = vmatprep.mubr.msk.f32.mxu0 %vm2474_vm0, %v2473_v0 }
 0x399   : > { %2109 = vmatprep.mubr.msk.f32.mxu1 %vm2474_vm0, %v2473_v0  ;;  %2172 = vmatprep.subr.mxu0 %v2473_v0 }
 0x39a   : > { %v1603_v39 = vpop.permute.xlu1 %1602 }
 0x39b   : > { %2165 = vmatmul.mubr.msk.f32.vlgmr.msra.gmra.mxu0 %vm412_vm2, %v1603_v39 }
 0x39c   : > { %2180 = vmatprep.mubr.msk.f32.mxu0 %vm2474_vm0, %v2473_v0 }
 0x3ad   : > { %v992_v40 = vpop.f32.mrf.mxu0 }
 0x3ae   : > { %v996_v58 = vsel %vm487_vm3, %v992_v40, -inf }
 0x3af   : > { %v2126_v41 = vpop.f32.mrf.mxu0 }
 0x3cb   : > { %v827_v42 = vpop.xlane.xlu1 %826 }
 0x3cc   : > { %v828_v43 = vsub.f32 %v2723_v19, %v827_v42 }
 0x3ce   : > { %v829_v45 = vmul.f32 1.442695, %v828_v43 }
 0x3d0   : > { %2288 = vpow2.f32 %v829_v45 }
 0x3dd   : > { %v2778_v60 = vpop.eup %2288 }
 0x3de   : > { %v831_v63 = vsel %vm487_vm3, %v2778_v60, 0.0 }
 0x44b   : > { %v1163_v44 = vpop.f32.mrf.mxu0 }
 0x44c   : > { %v1167_v62 = vsel %vm487_vm3, %v1163_v44, -inf }
 0x44d   : > { %v2136_v46 = vpop.f32.mrf.mxu0 }
 0x453   : > { %v571_v47 = vpop.f32.mrf.mxu1  ;;  %v1334_v48 = vpop.f32.mrf.mxu0 }
 0x454   : > { %575 = vst.msk [vmem:[#allocation2] sm:$0xff] %vm412_vm2, %v571_v47  ;;  %v1338_v49 = vsel %vm487_vm3, %v1334_v48, -inf }
 0x455   : > { %v2101_v50 = vpop.f32.mrf.mxu1  ;;  %1339 = vmax.xlane.f32.xlu1 %v1338_v49  ;;  %v2146_v51 = vpop.f32.mrf.mxu0 }
 0x457   : > { %v650_v52 = vpop.f32.mrf.mxu1  ;;  %v1505_v53 = vpop.f32.mrf.mxu0 }
 0x458   : > { %v654_v54 = vsel %vm487_vm3, %v650_v52, -inf  ;;  %v1509_v1 = vsel %vm487_vm3, %v1505_v53, -inf }
 0x459   : > { %655 = vmax.xlane.f32.xlu0 %v654_v54  ;;  %v2106_v55 = vpop.f32.mrf.mxu1  ;;  %v2156_v56 = vpop.f32.mrf.mxu0 }
 0x45b   : > { %v1676_v57 = vpop.f32.mrf.mxu0 }
 0x45c   : > { %v1680_v59 = vsel %vm487_vm3, %v1676_v57, -inf }
 0x45d   : > { %997 = vmax.xlane.f32.xlu0 %v996_v58  ;;  %1681 = vmax.xlane.f32.xlu1 %v1680_v59  ;;  %v2166_v61 = vpop.f32.mrf.mxu0 }
 0x461   : > { %1168 = vmax.xlane.f32.xlu0 %v1167_v62  ;;  %832 = vadd.xlane.f32.xlu1 %v831_v63 }
 0x465   : > { %1510 = vmax.xlane.f32.xlu0 %v1509_v1 }
 0x4de   : > { %v1340_v2 = vpop.xlane.xlu1 %1339 }
 0x4df   : > { %v1341_v4 = vsub.f32 %v1334_v48, %v1340_v2 }
 0x4e1   : > { %v1342_v10 = vmul.f32 1.442695, %v1341_v4 }
 0x4e2   : > { %v656_v3 = vpop.xlane.xlu0 %655 }
 0x4e3   : > { %v657_v15 = vsub.f32 %v650_v52, %v656_v3 }
 0x4e5   : > { %v658_v20 = vmul.f32 1.442695, %v657_v15 }
 0x4e6   : > { %v998_v6 = vpop.xlane.xlu0 %997  ;;  %v1682_v7 = vpop.xlane.xlu1 %1681 }
 0x4e7   : > { %v999_v9 = vsub.f32 %v992_v40, %v998_v6  ;;  %v1683_v12 = vsub.f32 %v1676_v57, %v1682_v7  ;;  %v1777_v6 = vld [vmem:[#allocation8 + $0x18] sm:$0xff]  ;;  %v1776_v7 = vld [vmem:[#allocation8 + $0x10] sm:$0xff] }
 0x4e8   : > { %2173 = vmatpush3.msra.mxu0 %v1777_v6 }
 0x4e9   : > { %v1000_v11 = vmul.f32 1.442695, %v999_v9  ;;  %v1684_v16 = vmul.f32 1.442695, %v1683_v12  ;;  %2174 = vmatprep.subr.mxu0 %v2473_v0  ;;  %v1774_v12 = vld [vmem:[#allocation8] sm:$0xff] }
 0x4ea   : > { %v1169_v13 = vpop.xlane.xlu0 %1168  ;;  %v833_v34 = vpop.xlane.xlu1 %832  ;;  %2175 = vmatpush3.msra.mxu0 %v1776_v7 }
 0x4eb   : > { %2290 = vpow2.f32 %v1000_v11  ;;  %v1170_v14 = vsub.f32 %v1163_v44, %v1169_v13  ;;  %2176 = vmatprep.subr.mxu0 %v2473_v0 }
 0x4ec   : > { %2292 = vpow2.f32 %v1342_v10  ;;  %v1775_v10 = vld [vmem:[#allocation8 + $0x8] sm:$0xff] }
 0x4ed   : > { %v1171_v17 = vmul.f32 1.442695, %v1170_v14  ;;  %2177 = vmatpush3.msra.mxu0 %v1775_v10 }
 0x4ee   : > { %v1511_v18 = vpop.xlane.xlu0 %1510  ;;  %2178 = vmatprep.subr.mxu0 %v2473_v0 }
 0x4ef   : > { %2294 = vpow2.f32 %v1171_v17  ;;  %v1512_v19 = vsub.f32 %v1505_v53, %v1511_v18  ;;  %2179 = vmatpush3.msra.mxu0 %v1774_v12 }
 0x4f0   : > { %2296 = vpow2.f32 %v1684_v16 }
 0x4f1   : > { %v1513_v21 = vmul.f32 1.442695, %v1512_v19 }
 0x4f3   : > { %2298 = vpow2.f32 %v1513_v21 }
 0x4f4   : > { %2300 = vpow2.f32 %v658_v20 }
 0x4f8   : > { %v2784_v22 = vpop.eup %2290 }
 0x4f9   : > { %v1002_v23 = vsel %vm487_vm3, %v2784_v22, 0.0  ;;  %v2788_v24 = vpop.eup %2292 }
 0x4fa   : > { %1003 = vadd.xlane.f32.xlu0 %v1002_v23  ;;  %v1344_v26 = vsel %vm487_vm3, %v2788_v24, 0.0 }
 0x4fc   : > { %v2790_v25 = vpop.eup %2294 }
 0x4fd   : > { %v1173_v27 = vsel %vm487_vm3, %v2790_v25, 0.0  ;;  %v2796_v28 = vpop.eup %2296 }
 0x4fe   : > { %1345 = vadd.xlane.f32.xlu0 %v1344_v26  ;;  %1174 = vadd.xlane.f32.xlu1 %v1173_v27  ;;  %v1686_v31 = vsel %vm487_vm3, %v2796_v28, 0.0 }
 0x500   : > { %v2798_v29 = vpop.eup %2298 }
 0x501   : > { %v1515_v30 = vsel %vm487_vm3, %v2798_v29, 0.0  ;;  %v2301_v32 = vpop.eup %2300 }
 0x502   : > { %1516 = vadd.xlane.f32.xlu1 %v1515_v30  ;;  %1687 = vadd.xlane.f32.xlu0 %v1686_v31  ;;  %v660_v33 = vsel %vm487_vm3, %v2301_v32, 0.0 }
 0x506   : > { %661 = vadd.xlane.f32.xlu0 %v660_v33 }
 0x513   : > { %665 = vrot.lane.b32.xlu1 %v2697_v8, %s2491_s21  ;;  %s2505_s21 = smov [#allocation9]  }
 0x517   : > { %1007 = vrot.lane.b32.xlu1 %v2697_v8, %s2492_s22 }
 0x51b   : > { %1178 = vrot.lane.b32.xlu1 %v2697_v8, %s2493_s14 }
 0x51c   : > { %836 = vrot.lane.b32.xlu0 %v2697_v8, %s2494_s16 }
 0x51f   : > { %1520 = vrot.lane.b32.xlu1 %v2697_v8, %s2495_s17 }
 0x520   : > { %1349 = vrot.lane.b32.xlu0 %v2697_v8, %s2496_s15 }
 0x524   : > { %1691 = vrot.lane.b32.xlu0 %v2697_v8, %s2497_s19  ;;  %s2036_s19 = sshll.u32 %s2567_s28, 7  ;;  %s2402_s28 = sshll.u32 %s2505_s21, 4  ;;  %s2403_s28 = int_to_ptr.vmem [resolvable:$false] %s2402_s28 }
 0x583   : > { %v1004_v35 = vpop.xlane.xlu0 %1003 }
 0x587   : > { %v1346_v36 = vpop.xlane.xlu0 %1345  ;;  %v1175_v37 = vpop.xlane.xlu1 %1174 }
 0x58b   : > { %v1688_v38 = vpop.xlane.xlu0 %1687  ;;  %v1517_v39 = vpop.xlane.xlu1 %1516 }
 0x58f   : > { %v662_v40 = vpop.xlane.xlu0 %661  ;;  %v666_v41 = vpop.permute.xlu1 %665 }
 0x590   : > { %2302 = vrcp.f32 %v662_v40  ;;  %2108 = vmatpush3.msra.mxu1 %v666_v41  ;;  %v2034_v41 = vld [vmem:[%s2903_s6] ss:$0 sm:$0xff] }
 0x591   : > { %2117 = vmatprep.subr.mxu1 %v2473_v0  ;;  %2304 = vrcp.f32 %v833_v34 }
 0x592   : > { %2306 = vrcp.f32 %v1004_v35 }
 0x593   : > { %2308 = vrcp.f32 %v1175_v37  ;;  %v837_v8 = vpop.permute.xlu0 %836  ;;  %v1008_v45 = vpop.permute.xlu1 %1007 }
 0x594   : > { %2310 = vrcp.f32 %v1346_v36 }
 0x595   : > { %2312 = vrcp.f32 %v1517_v39 }
 0x596   : > { %2314 = vrcp.f32 %v1688_v38 }
 0x597   : > { %v1179_v50 = vpop.permute.xlu1 %1178  ;;  %v1350_v53 = vpop.permute.xlu0 %1349 }
 0x59b   : > { %v1521_v56 = vpop.permute.xlu1 %1520  ;;  %v1692_v59 = vpop.permute.xlu0 %1691 }
 0x59d   : > { %v2303_v42 = vpop.eup %2302 }
 0x59e   : > { %v664_v43 = vmul.f32 %v2303_v42, %v2301_v32  ;;  %v2305_v44 = vpop.eup %2304 }
 0x59f   : > { %v835_v46 = vmul.f32 %v2305_v44, %v2778_v60  ;;  %v2307_v47 = vpop.eup %2306 }
 0x5a0   : > { %2110 = vmatmul.mubr.msk.f32.vlgmr.msra.gmra.mxu1 %vm487_vm3, %v664_v43  ;;  %v1006_v48 = vmul.f32 %v2307_v47, %v2784_v22  ;;  %v2309_v49 = vpop.eup %2308 }
 0x5a1   : > { %2118 = vmatpush3.msra.mxu1 %v837_v8  ;;  %2119 = vmatprep.mubr.msk.f32.mxu1 %vm2474_vm0, %v2473_v0  ;;  %v1177_v51 = vmul.f32 %v2309_v49, %v2790_v25  ;;  %v2311_v52 = vpop.eup %2310  ;;  %v2031_v25 = vld [vmem:[%s2901_s4] ss:$0 sm:$0xff] }
 0x5a2   : > { %2127 = vmatprep.subr.mxu1 %v2473_v0  ;;  %v1348_v54 = vmul.f32 %v2311_v52, %v2788_v24  ;;  %v2313_v55 = vpop.eup %2312 }
 0x5a3   : > { %v1519_v57 = vmul.f32 %v2313_v55, %v2798_v29  ;;  %v2315_v58 = vpop.eup %2314 }
 0x5a4   : > { %2120 = vmatmul.mubr.msk.f32.vlgmr.msra.gmra.mxu1 %vm487_vm3, %v835_v46  ;;  %v1690_v60 = vmul.f32 %v2315_v58, %v2796_v28 }
 0x5a5   : > { %2128 = vmatpush3.msra.mxu1 %v1008_v45  ;;  %2129 = vmatprep.mubr.msk.f32.mxu1 %vm2474_vm0, %v2473_v0 }
 0x5a6   : > { %2137 = vmatprep.subr.mxu1 %v2473_v0 }
 0x5a8   : > { %2130 = vmatmul.mubr.msk.f32.vlgmr.msra.gmra.mxu1 %vm487_vm3, %v1006_v48 }
 0x5a9   : > { %2138 = vmatpush3.msra.mxu1 %v1179_v50  ;;  %2139 = vmatprep.mubr.msk.f32.mxu1 %vm2474_vm0, %v2473_v0 }
 0x5aa   : > { %2147 = vmatprep.subr.mxu1 %v2473_v0 }
 0x5ac   : > { %2140 = vmatmul.mubr.msk.f32.vlgmr.msra.gmra.mxu1 %vm487_vm3, %v1177_v51 }
 0x5ad   : > { %2148 = vmatpush3.msra.mxu1 %v1350_v53  ;;  %2149 = vmatprep.mubr.msk.f32.mxu1 %vm2474_vm0, %v2473_v0 }
 0x5ae   : > { %2157 = vmatprep.subr.mxu1 %v2473_v0 }
 0x5b0   : > { %2150 = vmatmul.mubr.msk.f32.vlgmr.msra.gmra.mxu1 %vm487_vm3, %v1348_v54 }
 0x5b1   : > { %2158 = vmatpush3.msra.mxu1 %v1521_v56  ;;  %2159 = vmatprep.mubr.msk.f32.mxu1 %vm2474_vm0, %v2473_v0 }
 0x5b2   : > { %2167 = vmatprep.subr.mxu1 %v2473_v0 }
 0x5b4   : > { %2160 = vmatmul.mubr.msk.f32.vlgmr.msra.gmra.mxu1 %vm487_vm3, %v1519_v57 }
 0x5b5   : > { %2168 = vmatpush3.msra.mxu1 %v1692_v59  ;;  %2169 = vmatprep.mubr.msk.f32.mxu1 %vm2474_vm0, %v2473_v0 }
 0x5b8   : > { %2170 = vmatmul.mubr.msk.f32.vlgmr.msra.gmra.mxu1 %vm487_vm3, %v1690_v60 }
 0x660   : > { %v737_v61 = vpop.f32.mrf.mxu1 }
 0x661   : > { %742 = vrot.lane.b32.xlu1 %v737_v61, %s2498_s13  ;;  %s322_s13 = scalar_lea.vmem [#allocation9], %s2001_s10  ;;  %s2404_s10 = scalar_lea.vmem %s2403_s28, 256 }
 0x662   : > { %v2111_v62 = vpop.f32.mrf.mxu1 }
 0x664   : > { %v908_v63 = vpop.f32.mrf.mxu1 }
 0x665   : > { %913 = vrot.lane.b32.xlu0 %v908_v63, %s2499_s1  ;;  %s1904_s1 = sshll.u32 %s322_s13, 4  ;;  %s1905_s1 = int_to_ptr.vmem [resolvable:$true] %s1904_s1 }
 0x666   : > { %v2121_v1 = vpop.f32.mrf.mxu1  ;;  %p2405_p6 = scmp.lt.s32.totalorder %s1905_s1, %s2403_s28 }
 0x668   : > { %v1079_v2 = vpop.f32.mrf.mxu1 }
 0x669   : > { %1084 = vrot.lane.b32.xlu1 %v1079_v2, %s2500_s3 }
 0x66a   : > { %v2131_v3 = vpop.f32.mrf.mxu1 }
 0x66c   : > { %v1250_v4 = vpop.f32.mrf.mxu1 }
 0x66d   : > { %1255 = vrot.lane.b32.xlu0 %v1250_v4, %s2501_s30 }
 0x66e   : > { %v2141_v9 = vpop.f32.mrf.mxu1 }
 0x670   : > { %v1421_v11 = vpop.f32.mrf.mxu1 }
 0x671   : > { %1426 = vrot.lane.b32.xlu1 %v1421_v11, %s2502_s9  ;;  %s1902_s9 = scalar_lea.hbm %s2904_s7, %s2036_s19 }
 0x672   : > { %v2151_v13 = vpop.f32.mrf.mxu1 }
 0x674   : > { %v1592_v14 = vpop.f32.mrf.mxu1 }
 0x675   : > { %1597 = vrot.lane.b32.xlu0 %v1592_v14, %s2503_s18  ;;  %s1891_s18 = scalar_lea.sflag [#allocation5], %s2664_s29 }
 0x676   : > { %v2161_v15 = vpop.f32.mrf.mxu1 }
 0x678   : > { %v1763_v16 = vpop.f32.mrf.mxu1 }
 0x679   : > { %1768 = vrot.lane.b32.xlu1 %v1763_v16, %s2504_s20  ;;  %s2398_s20 = scalar_lea.vmem %s1905_s1, 128 }
 0x67a   : > { %v2171_v17 = vpop.f32.mrf.mxu1  ;;  %p2399_p11 = scmp.ne.s32.totalorder %s1905_s1, %s2398_s20  ;;  %p2406_p12 = scmp.lt.s32.totalorder %s2404_s10, %s2398_s20 }
 0x67c   : > { %p2400_p1 = pnand %p2399_p11, %p2924_p0  ;;  %p2407_p7 = por %p2406_p12, %p2405_p6 }
 0x67e   : > { %p2401_p2 = pneg %p2400_p1 }
 0x680   : > { %p2408_p9 = pnand %p2407_p7, %p2401_p2 }
 0x6d3   : > { %v743_v18 = vpop.permute.xlu1 %742 }
 0x6d4   : > { %746 = vst.msk [vmem:[#allocation2] sm:$0xff] %vm745_vm4, %v743_v18 }
 0x6d7   : > { %v914_v19 = vpop.permute.xlu0 %913 }
 0x6d8   : > { %917 = vst.msk [vmem:[#allocation2] sm:$0xff] %vm916_vm5, %v914_v19 }
 0x6db   : > { %v1085_v20 = vpop.permute.xlu1 %1084 }
 0x6dc   : > { %1088 = vst.msk [vmem:[#allocation2] sm:$0xff] %vm1087_vm6, %v1085_v20 }
 0x6df   : > { %v1256_v0 = vpop.permute.xlu0 %1255 }
 0x6e0   : > { %1259 = vst.msk [vmem:[#allocation2] sm:$0xff] %vm1258_vm7, %v1256_v0 }
 0x6e3   : > { %v1427_v21 = vpop.permute.xlu1 %1426 }
 0x6e4   : > { %1430 = vst.msk [vmem:[#allocation2] sm:$0xff] %vm1429_vm8, %v1427_v21 }
 0x6e7   : > { %v1598_v22 = vpop.permute.xlu0 %1597 }
 0x6e8   : > { %1601 = vst.msk [vmem:[#allocation2] sm:$0xff] %vm1600_vm9, %v1598_v22 }
 0x6eb   : > { %v1769_v23 = vpop.permute.xlu1 %1768 }
 0x6ec   : > { %1772 = vst.msk [vmem:[#allocation2] sm:$0xff] %vm1771_vm10, %v1769_v23 }
 0x6f3   : > { %v1773_v24 = vld [vmem:[#allocation2] sm:$0xff] }
 0x6f4   : > { %2181 = vmatmul.mubr.msk.f32.vlgmr.msra.gmra.mxu0 %vm335_vm1, %v1773_v24 }
 0x7b4   : > { %v1854_v26 = vpop.f32.mrf.mxu0 }
 0x7b5   : > { %v1855_v27 = vadd.f32 %v2031_v25, %v1854_v26 }
 0x7b6   : > { %v2182_v28 = vpop.f32.mrf.mxu0 }
 0x7b7   : > { %v1858_v29 = vadd.f32 %v1855_v27, %v2686_v5  ;;  %v2033_v5 = vld [vmem:[%s2902_s5] ss:$0 sm:$0xff] }
 0x7b9   : > { %v1859_v30 = vsel %vm335_vm1, %v1858_v29, 0.0 }
 0x7ba   : > { %1860 = vadd.xlane.f32.xlu0 %v1859_v30 }
 0x843   : > { %v1861_v31 = vpop.xlane.xlu0 %1860 }
 0x844   : > { %v1863_v32 = vmul.f32 0.03125, %v1861_v31 }
 0x846   : > { %v1864_v33 = vsub.f32 %v1858_v29, %v1863_v32 }
 0x848   : > { %v1865_v34 = vmul.f32 %v1864_v33, %v1864_v33 }
 0x84a   : > { %v1866_v35 = vsel %vm335_vm1, %v1865_v34, 0.0 }
 0x84b   : > { %1867 = vadd.xlane.f32.xlu1 %v1866_v35 }
 0x8d4   : > { %v1868_v36 = vpop.xlane.xlu1 %1867 }
 0x8d5   : > { %v1869_v37 = vmul.f32 0.03125, %v1868_v36 }
 0x8d7   : > { %v1870_v38 = vadd.f32 1e-05, %v1869_v37 }
 0x8d9   : > { %2316 = vrsqrt.f32 %v1870_v38 }
 0x8e6   : > { %v2317_v39 = vpop.eup %2316 }
 0x8e7   : > { %v1872_v40 = vmul.f32 %v2317_v39, %v1864_v33 }
 0x8e9   : > { %v1880_v42 = vmul.f32 %v2033_v5, %v1872_v40 }
 0x8eb   : > { %v1888_v43 = vadd.f32 %v2034_v41, %v1880_v42 }
 0x8ed   : > { %1889 = vst.msk [vmem:[%s322_s13] sm:$0xff] %vm335_vm1, %v1888_v43 }
 0x8ee   : > { %2411 = shalt.err (!%p2408_p9)
}
 0x8ef   : > { %s2412_s22 = scalar_lea.hbm %s1902_s9, 128  ;;  %s2416_s16 = scalar_lea.hbm %s2904_s7, 256 }
 0x8f0   : > { %p2413_p13 = scmp.ne.s32.totalorder %s1902_s9, %s2412_s22  ;;  %p2417_p4 = scmp.lt.s32.totalorder %s1902_s9, %s2904_s7 }
 0x8f1   : > { %p2418_p8 = scmp.lt.s32.totalorder %s2416_s16, %s2412_s22 }
 0x8f2   : > { %p2414_p5 = pnand %p2413_p13, %p2924_p0 }
 0x8f3   : > { %p2419_p3 = por %p2418_p8, %p2417_p4 }
 0x8f4   : > { %p2415_p10 = pneg %p2414_p5 }
 0x8f6   : > { %p2420_p11 = pnand %p2419_p3, %p2415_p10 }
 0x8f8   : > { %2423 = shalt.err (!%p2420_p11)
}
 0x8f9   : > { %2193 = dma.vmem_to_hbm [thread:$0]  (%p2924_p0), %s1905_s1, 128, %s1902_s9, %s1891_s18  }
 0x8fa PF: > { %s1916_s19 = sand.u32 1, %s2454_s24   ;;  %p2925_p1 = scmp.ne.s32.totalorder %s2912_s8, 0 }
 0x8fb   : > { %p2926_p2 = scmp.ge.s32.totalorder %s2466_s27, 2  ;;  %s1917_s13 = scalar_lea.sflag [#allocation5], %s1916_s19 }
 0x8fd   : > { %p2207_p6 = pnand %p2926_p2, %p2925_p1 }
 0x8ff   : > { %p2208_p12 = pneg %p2207_p6 }
 0x901   : > { %2449 = dma.done.wait (%p2208_p12), %s1917_s13, 128  }
 0x902   : > { %2451 = vsyncadd (%p2208_p12), %s1917_s13, 4294967168  ;;  %p21_p7 = scmp.ge.s32.totalorder %s2618_s23, 4   ;;  %s2927_s24 = smov %s2458_s25 }
 0x903   : > { %s2928_s25 = smov %s2462_s26  ;;  %s2929_s26 = smov %s2634_s12 }
 0x904   : > { %s2930_s27 = smov %s2618_s23  ;;  %23 = sbr.rel (!%p21_p7) target bundleno = 9 (0x9), region = 101 }
 0x909   :  { %1922 = vsyncpa [#allocation4], 1 }
 0x90a   :  { %1924 = vsyncpa [#allocation4 + $0x1], 1 }
 0x90b   :  { %1925 = vsyncpa [#allocation7], 1 }
 0x90c   :  { %1926 = vsyncpa [#allocation5], 1 }
 0x90d   :  { %1928 = vsyncpa [#allocation5 + $0x1], 1 }

</bundles_post_ra>
